<compile_context>
chip_gen: v5e
topology: v5e:2x2
jax: 0.10.0
libtpu: 0.0.40
codegen_flags: <defaults>
</compile_context>

<pallas_src>
import numpy as np
import jax
import jax.numpy as jnp
from jax.experimental import pallas as pl
from jax.experimental.pallas import tpu as pltpu

EPS = 1e-6
LANE = 128
SUBROWS = 8                       # batch shards stacked on the sublane axis
X_BLOCK_BYTES = 2 * 1024 * 1024   # f32 logits per pipeline block (per buffer)


def _round_up(a: int, b: int) -> int:
    return (a + b - 1) // b * b


def _cdiv(a: int, b: int) -> int:
    return (a + b - 1) // b


def _make_kernel(num_class: int, subrows: int):
    K = num_class
    S = subrows

    def kernel(x_ref, lab_ref, out_ref, pu_acc, ce_acc, np_acc):
        j = pl.program_id(1)

        @pl.when(j == 0)
        def _init():
            pu_acc[...] = jnp.zeros_like(pu_acc)
            ce_acc[...] = jnp.zeros_like(ce_acc)
            np_acc[...] = jnp.zeros_like(np_acc)

        lab = lab_ref[...]                                       # (S, T) int32
        # padded columns carry label -1: excluded from P (>= 0 check) and U (> K-1).
        p_mask = jnp.logical_and(lab >= 0, lab <= K - 1).astype(jnp.float32)
        u_mask = (lab > K - 1).astype(jnp.float32)

        # class-k logits live in the tile-aligned sublane slab x[k*S:(k+1)*S, :].
        xk = [x_ref[k * S:(k + 1) * S, :].astype(jnp.float32) for k in range(K)]

        m = xk[0]
        for k in range(1, K):
            m = jnp.maximum(m, xk[k])                            # per-sample max

        ek = [jnp.exp(xk[k] - m) for k in range(K)]              # K exps / sample
        s = ek[0]
        for k in range(1, K):
            s = s + ek[k]
        log_s = jnp.log(s)

        # sum_k -log(1 - e_k/s + eps) == K*log(s) - log(prod_k (s*(1+eps) - e_k))
        # (terms are in [eps*s, s]; product is safe in f32 for small K).
        s_eps = s * (1.0 + EPS)
        prod_t = s_eps - ek[0]
        for k in range(1, K):
            prod_t = prod_t * (s_eps - ek[k])
        pu_acc[...] += (K * log_s - jnp.log(prod_t)) * u_mask

        # CE for positives: -(x[label] - m - log s); no one-hot / log-softmax array.
        picked = jnp.zeros_like(m)
        for k in range(K):
            picked = picked + jnp.where(lab == k, xk[k], 0.0)
        ce_acc[...] += ((m + log_s) - picked) * p_mask
        np_acc[...] += p_mask

        @pl.when(j == pl.num_programs(1) - 1)
        def _finalize():
            pu_sum = jnp.sum(pu_acc[...])
            ce_sum = jnp.sum(ce_acc[...])
            n_p = jnp.sum(np_acc[...])
            lane = jax.lax.broadcasted_iota(jnp.int32, (1, LANE), 1)
            vals = (jnp.where(lane == 0, pu_sum, 0.0)
                    + jnp.where(lane == 1, ce_sum, 0.0)
                    + jnp.where(lane == 2, n_p, 0.0))
            out_ref[0] = vals                                    # lanes 0..2 used

    return kernel


def nnmpu_loss(outputs, labels, priorlist, indexlist, kp, kn, *, num_class, pu_w):
    """Pallas implementation of nnMPULoss.forward.

    outputs:   [N, K] float (any float dtype; cast to f32 per-tile in the kernel)
    labels:    [N]    int   (label <= K-1 => positive, label > K-1 => unlabeled)
    priorlist: [K]    float (only used by the statically-dead pu1 branch)
    indexlist: [K]    float (binary indicator; drops out once pu3+pu4 fuse)
    kp, kn:    unused (signature parity with the PyTorch module)
    """
    del priorlist, indexlist, kp, kn  # unused on the live (fused) code path
    N, K = outputs.shape
    assert K == num_class
    S = SUBROWS

    # --- tile / grid geometry -------------------------------------------------
    # Block = (K*S, tile_c) logits + (S, tile_c) labels. Cap the f32 logits block
    # at X_BLOCK_BYTES so (2x double-buffered inputs + f32 temporaries + 3
    # accumulators) stays well under the 32 MiB scoped-VMEM limit on every
    # generation (v7x has only 64 MiB physical per TensorCore).
    cap_cols = max(LANE, ((X_BLOCK_BYTES // (K * S * 4)) // LANE) * LANE)
    cols_needed = _cdiv(N, S)
    tile_c = min(cap_cols, _round_up(cols_needed, LANE))
    blocks = _cdiv(cols_needed, tile_c)
    num_mc = 2 if blocks >= 2 else 1           # dual-TensorCore split on v7x
    blocks_per_mc = _cdiv(blocks, num_mc)
    n_blocks = num_mc * blocks_per_mc
    C = n_blocks * tile_c                      # columns per sublane shard
    n_pad = S * C

    # --- sublane-dense, class-major layout -------------------------------------
    # row (k*S + s), col c  <-  sample (s*C + c), class k. Single fused
    # pad+reshape+transpose copy; labels need only a free reshape.
    x = outputs
    lab = labels.astype(jnp.int32)
    if n_pad != N:
        x = jnp.pad(x, ((0, n_pad - N), (0, 0)))
        lab = jnp.pad(lab, (0, n_pad - N), constant_values=-1)
    x_l = jnp.transpose(x.reshape(S, C, K), (2, 0, 1)).reshape(K * S, C)
    lab_l = lab.reshape(S, C)

    bpm = blocks_per_mc
    x_map = lambda p, j: (0, p * bpm + j)
    l_map = lambda p, j: (0, p * bpm + j)

    out = pl.pallas_call(
        _make_kernel(K, S),
        out_shape=jax.ShapeDtypeStruct((num_mc, 1, LANE), jnp.float32),
        grid=(num_mc, blocks_per_mc),
        in_specs=[
            pl.BlockSpec((K * S, tile_c), x_map),
            pl.BlockSpec((S, tile_c), l_map),
        ],
        out_specs=pl.BlockSpec((1, 1, LANE), lambda p, j: (p, 0, 0)),
        scratch_shapes=[pltpu.VMEM((S, tile_c), jnp.float32) for _ in range(3)],
        compiler_params=pltpu.CompilerParams(
            dimension_semantics=("parallel", "arbitrary"),
            vmem_limit_bytes=32 * 1024 * 1024,
        ),
    )(x_l, lab_l)

    # --- combine the per-core partial sums (tiny scalar ops) --------------------
    pu_sum = jnp.sum(out[:, 0, 0])
    ce_sum = jnp.sum(out[:, 0, 1])
    n_p = jnp.sum(out[:, 0, 2])
    n_u = float(N) - n_p                       # |U| = N - |P| (N is static)
    pu_loss = pu_sum / jnp.maximum(n_u, 1.0)
    scaled_pu = pu_loss * float(pu_w)
    crossloss = jnp.where(n_p > 0.0, ce_sum / jnp.maximum(n_p, 1.0), 0.0)
    objective = scaled_pu + crossloss
    return objective, scaled_pu, crossloss


def _numpy_reference(outputs, labels, indexlist, num_class, pu_w):
    # Unfused reference, written exactly like the PyTorch forward.
    x = np.asarray(outputs, dtype=np.float32)
    lab = np.asarray(labels)
    idx = np.asarray(indexlist, dtype=np.float32)
    K = num_class
    m = x.max(axis=1, keepdims=True)
    e = np.exp(x - m)
    soft = e / e.sum(axis=1, keepdims=True)
    logsoft = x - (m + np.log(e.sum(axis=1, keepdims=True)))
    p_sel = lab <= K - 1
    u_sel = ~p_sel
    ulist = 1.0 - idx
    n_u = int(u_sel.sum())
    logterm_u = -np.log(1.0 - soft[u_sel] + EPS)
    pu3 = (logterm_u * idx).sum() / max(1, n_u)
    pu4 = (logterm_u * ulist).sum() / max(1, n_u)
    pu_loss = pu3 + pu4
    if p_sel.sum() > 0:
        ce = -logsoft[p_sel, lab[p_sel]].mean()
    else:
        ce = 0.0
    return pu_loss * pu_w + ce, pu_loss * pu_w, ce


if __name__ == "__main__":
    key = jax.random.PRNGKey(0)
    N, K = 13, 4            # small batch, numClass = 4 (exercises P, U and padding)
    PU_W = 1.5

    outputs = jax.random.normal(key, (N, K), dtype=jnp.float32)
    # labels <= 3 are positive, labels >= 4 are unlabeled
    labels = jnp.array([0, 1, 2, 3, 1, 4, 5, 6, 7, 4, 2, 5, 4], dtype=jnp.int32)
    indexlist = jnp.array([1.0, 1.0, 0.0, 0.0], dtype=jnp.float32)
    priorlist = jnp.full((K,), 0.25, dtype=jnp.float32)
    kp, kn = 2, 2  # unused in forward

    obj, pu, ce = nnmpu_loss(
        outputs, labels, priorlist, indexlist, kp, kn, num_class=K, pu_w=PU_W
    )
    jax.block_until_ready((obj, pu, ce))

    ref_obj, ref_pu, ref_ce = _numpy_reference(outputs, labels, indexlist, K, PU_W)
    np.testing.assert_allclose(np.array(obj), ref_obj, rtol=1e-5, atol=1e-5)
    np.testing.assert_allclose(np.array(pu), ref_pu, rtol=1e-5, atol=1e-5)
    np.testing.assert_allclose(np.array(ce), ref_ce, rtol=1e-5, atol=1e-5)

    print("KERNEL_OK")
</pallas_src>

<mosaic_0001>
module attributes {stable_mosaic.version = 11 : i64} {
  func.func @kernel(%arg0: i32, %arg1: i32, %arg2: memref<32x128xf32, #tpu.memory_space<vmem>>, %arg3: memref<8x128xi32, #tpu.memory_space<vmem>>, %arg4: memref<1x1x128xf32, #tpu.memory_space<vmem>>, %arg5: memref<8x128xf32, #tpu.memory_space<vmem>>, %arg6: memref<8x128xf32, #tpu.memory_space<vmem>>, %arg7: memref<8x128xf32, #tpu.memory_space<vmem>>) attributes {dimension_semantics = [#tpu.dimension_semantics<parallel>, #tpu.dimension_semantics<arbitrary>], iteration_bounds = array<i64: 1, 1>, scalar_prefetch = 0 : i64, scratch_operands = 3 : i64, tpu.core_type = #tpu.core_type<tc>, window_params = [{transform_indices = @transform_0, window_bounds = array<i64: 32, 128>}, {transform_indices = @transform_1, window_bounds = array<i64: 8, 128>}, {transform_indices = @transform_2, window_bounds = array<i64: 1, 1, 128>}]} {
    %c0_i32 = arith.constant 0 : i32
    %0 = arith.cmpi eq, %arg1, %c0_i32 : i32
    %1 = arith.extui %0 : i1 to i32
    %c0_i32_0 = arith.constant 0 : i32
    %2 = arith.cmpi ne, %1, %c0_i32_0 : i32
    scf.if %2 {
      %cst_31 = arith.constant 0.000000e+00 : f32
      %84 = vector.broadcast %cst_31 : f32 to vector<8x128xf32>
      %c0_32 = arith.constant 0 : index
      %c0_33 = arith.constant 0 : index
      %85 = vector.load %arg5[%c0_32, %c0_33] : memref<8x128xf32, #tpu.memory_space<vmem>>, vector<8x128xf32>
      tpu.vector_store %arg5[%c0_32, %c0_33], %84 {strides = array<i32>} : memref<8x128xf32, #tpu.memory_space<vmem>>, vector<8x128xf32>,
      %cst_34 = arith.constant 0.000000e+00 : f32
      %86 = vector.broadcast %cst_34 : f32 to vector<8x128xf32>
      %c0_35 = arith.constant 0 : index
      %c0_36 = arith.constant 0 : index
      %87 = vector.load %arg6[%c0_35, %c0_36] : memref<8x128xf32, #tpu.memory_space<vmem>>, vector<8x128xf32>
      tpu.vector_store %arg6[%c0_35, %c0_36], %86 {strides = array<i32>} : memref<8x128xf32, #tpu.memory_space<vmem>>, vector<8x128xf32>,
      %cst_37 = arith.constant 0.000000e+00 : f32
      %88 = vector.broadcast %cst_37 : f32 to vector<8x128xf32>
      %c0_38 = arith.constant 0 : index
      %c0_39 = arith.constant 0 : index
      %89 = vector.load %arg7[%c0_38, %c0_39] : memref<8x128xf32, #tpu.memory_space<vmem>>, vector<8x128xf32>
      tpu.vector_store %arg7[%c0_38, %c0_39], %88 {strides = array<i32>} : memref<8x128xf32, #tpu.memory_space<vmem>>, vector<8x128xf32>,
    } else {
    }
    %c0 = arith.constant 0 : index
    %c0_1 = arith.constant 0 : index
    %3 = vector.load %arg3[%c0, %c0_1] : memref<8x128xi32, #tpu.memory_space<vmem>>, vector<8x128xi32>
    %c0_i32_2 = arith.constant 0 : i32
    %4 = vector.broadcast %c0_i32_2 : i32 to vector<8x128xi32>
    %5 = arith.cmpi sge, %3, %4 : vector<8x128xi32>
    %c3_i32 = arith.constant 3 : i32
    %6 = vector.broadcast %c3_i32 : i32 to vector<8x128xi32>
    %7 = arith.cmpi sle, %3, %6 : vector<8x128xi32>
    %8 = arith.andi %5, %7 : vector<8x128xi1>
    %9 = arith.extui %8 : vector<8x128xi1> to vector<8x128xi32>
    %10 = arith.sitofp %9 : vector<8x128xi32> to vector<8x128xf32>
    %c3_i32_3 = arith.constant 3 : i32
    %11 = vector.broadcast %c3_i32_3 : i32 to vector<8x128xi32>
    %12 = arith.cmpi sgt, %3, %11 : vector<8x128xi32>
    %13 = arith.extui %12 : vector<8x128xi1> to vector<8x128xi32>
    %14 = arith.sitofp %13 : vector<8x128xi32> to vector<8x128xf32>
    %c0_4 = arith.constant 0 : index
    %c0_5 = arith.constant 0 : index
    %15 = vector.load %arg2[%c0_4, %c0_5] : memref<32x128xf32, #tpu.memory_space<vmem>>, vector<8x128xf32>
    %c8 = arith.constant 8 : index
    %c0_6 = arith.constant 0 : index
    %16 = vector.load %arg2[%c8, %c0_6] : memref<32x128xf32, #tpu.memory_space<vmem>>, vector<8x128xf32>
    %c16 = arith.constant 16 : index
    %c0_7 = arith.constant 0 : index
    %17 = vector.load %arg2[%c16, %c0_7] : memref<32x128xf32, #tpu.memory_space<vmem>>, vector<8x128xf32>
    %c24 = arith.constant 24 : index
    %c0_8 = arith.constant 0 : index
    %18 = vector.load %arg2[%c24, %c0_8] : memref<32x128xf32, #tpu.memory_space<vmem>>, vector<8x128xf32>
    %19 = arith.maximumf %15, %16 : vector<8x128xf32>
    %20 = arith.maximumf %19, %17 : vector<8x128xf32>
    %21 = arith.maximumf %20, %18 : vector<8x128xf32>
    %22 = arith.subf %15, %21 : vector<8x128xf32>
    %23 = math.exp %22 : vector<8x128xf32>
    %24 = arith.subf %16, %21 : vector<8x128xf32>
    %25 = math.exp %24 : vector<8x128xf32>
    %26 = arith.subf %17, %21 : vector<8x128xf32>
    %27 = math.exp %26 : vector<8x128xf32>
    %28 = arith.subf %18, %21 : vector<8x128xf32>
    %29 = math.exp %28 : vector<8x128xf32>
    %30 = arith.addf %23, %25 : vector<8x128xf32>
    %31 = arith.addf %30, %27 : vector<8x128xf32>
    %32 = arith.addf %31, %29 : vector<8x128xf32>
    %33 = math.log %32 : vector<8x128xf32>
    %cst = arith.constant 1.00000095 : f32
    %34 = vector.broadcast %cst : f32 to vector<8x128xf32>
    %35 = arith.mulf %32, %34 : vector<8x128xf32>
    %36 = arith.subf %35, %23 : vector<8x128xf32>
    %37 = arith.subf %35, %25 : vector<8x128xf32>
    %38 = arith.mulf %36, %37 : vector<8x128xf32>
    %39 = arith.subf %35, %27 : vector<8x128xf32>
    %40 = arith.mulf %38, %39 : vector<8x128xf32>
    %41 = arith.subf %35, %29 : vector<8x128xf32>
    %42 = arith.mulf %40, %41 : vector<8x128xf32>
    %c0_9 = arith.constant 0 : index
    %c0_10 = arith.constant 0 : index
    %43 = vector.load %arg5[%c0_9, %c0_10] : memref<8x128xf32, #tpu.memory_space<vmem>>, vector<8x128xf32>
    %cst_11 = arith.constant 4.000000e+00 : f32
    %44 = vector.broadcast %cst_11 : f32 to vector<8x128xf32>
    %45 = arith.mulf %44, %33 : vector<8x128xf32>
    %46 = math.log %42 : vector<8x128xf32>
    %47 = arith.subf %45, %46 : vector<8x128xf32>
    %48 = arith.mulf %47, %14 : vector<8x128xf32>
    %49 = arith.addf %43, %48 : vector<8x128xf32>
    %c0_12 = arith.constant 0 : index
    %c0_13 = arith.constant 0 : index
    %50 = vector.load %arg5[%c0_12, %c0_13] : memref<8x128xf32, #tpu.memory_space<vmem>>, vector<8x128xf32>
    tpu.vector_store %arg5[%c0_12, %c0_13], %49 {strides = array<i32>} : memref<8x128xf32, #tpu.memory_space<vmem>>, vector<8x128xf32>,
    %cst_14 = arith.constant 0.000000e+00 : f32
    %51 = vector.broadcast %cst_14 : f32 to vector<8x128xf32>
    %c0_i32_15 = arith.constant 0 : i32
    %52 = vector.broadcast %c0_i32_15 : i32 to vector<8x128xi32>
    %53 = arith.cmpi eq, %3, %52 : vector<8x128xi32>
    %cst_16 = arith.constant 0.000000e+00 : f32
    %54 = vector.broadcast %cst_16 : f32 to vector<8x128xf32>
    %55 = arith.select %53, %15, %54 : vector<8x128xi1>, vector<8x128xf32>
    %56 = arith.addf %51, %55 : vector<8x128xf32>
    %c1_i32 = arith.constant 1 : i32
    %57 = vector.broadcast %c1_i32 : i32 to vector<8x128xi32>
    %58 = arith.cmpi eq, %3, %57 : vector<8x128xi32>
    %cst_17 = arith.constant 0.000000e+00 : f32
    %59 = vector.broadcast %cst_17 : f32 to vector<8x128xf32>
    %60 = arith.select %58, %16, %59 : vector<8x128xi1>, vector<8x128xf32>
    %61 = arith.addf %56, %60 : vector<8x128xf32>
    %c2_i32 = arith.constant 2 : i32
    %62 = vector.broadcast %c2_i32 : i32 to vector<8x128xi32>
    %63 = arith.cmpi eq, %3, %62 : vector<8x128xi32>
    %cst_18 = arith.constant 0.000000e+00 : f32
    %64 = vector.broadcast %cst_18 : f32 to vector<8x128xf32>
    %65 = arith.select %63, %17, %64 : vector<8x128xi1>, vector<8x128xf32>
    %66 = arith.addf %61, %65 : vector<8x128xf32>
    %c3_i32_19 = arith.constant 3 : i32
    %67 = vector.broadcast %c3_i32_19 : i32 to vector<8x128xi32>
    %68 = arith.cmpi eq, %3, %67 : vector<8x128xi32>
    %cst_20 = arith.constant 0.000000e+00 : f32
    %69 = vector.broadcast %cst_20 : f32 to vector<8x128xf32>
    %70 = arith.select %68, %18, %69 : vector<8x128xi1>, vector<8x128xf32>
    %71 = arith.addf %66, %70 : vector<8x128xf32>
    %c0_21 = arith.constant 0 : index
    %c0_22 = arith.constant 0 : index
    %72 = vector.load %arg6[%c0_21, %c0_22] : memref<8x128xf32, #tpu.memory_space<vmem>>, vector<8x128xf32>
    %73 = arith.addf %21, %33 : vector<8x128xf32>
    %74 = arith.subf %73, %71 : vector<8x128xf32>
    %75 = arith.mulf %74, %10 : vector<8x128xf32>
    %76 = arith.addf %72, %75 : vector<8x128xf32>
    %c0_23 = arith.constant 0 : index
    %c0_24 = arith.constant 0 : index
    %77 = vector.load %arg6[%c0_23, %c0_24] : memref<8x128xf32, #tpu.memory_space<vmem>>, vector<8x128xf32>
    tpu.vector_store %arg6[%c0_23, %c0_24], %76 {strides = array<i32>} : memref<8x128xf32, #tpu.memory_space<vmem>>, vector<8x128xf32>,
    %c0_25 = arith.constant 0 : index
    %c0_26 = arith.constant 0 : index
    %78 = vector.load %arg7[%c0_25, %c0_26] : memref<8x128xf32, #tpu.memory_space<vmem>>, vector<8x128xf32>
    %79 = arith.addf %78, %10 : vector<8x128xf32>
    %c0_27 = arith.constant 0 : index
    %c0_28 = arith.constant 0 : index
    %80 = vector.load %arg7[%c0_27, %c0_28] : memref<8x128xf32, #tpu.memory_space<vmem>>, vector<8x128xf32>
    tpu.vector_store %arg7[%c0_27, %c0_28], %79 {strides = array<i32>} : memref<8x128xf32, #tpu.memory_space<vmem>>, vector<8x128xf32>,
    %c0_i32_29 = arith.constant 0 : i32
    %81 = arith.cmpi eq, %arg1, %c0_i32_29 : i32
    %82 = arith.extui %81 : i1 to i32
    %c0_i32_30 = arith.constant 0 : i32
    %83 = arith.cmpi ne, %82, %c0_i32_30 : i32
    scf.if %83 {
      %c0_31 = arith.constant 0 : index
      %c0_32 = arith.constant 0 : index
      %84 = vector.load %arg5[%c0_31, %c0_32] : memref<8x128xf32, #tpu.memory_space<vmem>>, vector<8x128xf32>
      %85 = vector.shape_cast %84 : vector<8x128xf32> to vector<1x8x128xf32>
      %cst_33 = arith.constant dense<0.000000e+00> : vector<1xf32>
      %86 = vector.multi_reduction <add>, %85, %cst_33 [1, 2] : vector<1x8x128xf32> to vector<1xf32>
      %87 = vector.shape_cast %86 : vector<1xf32> to vector<1x1x1xf32>
      %88 = vector.extract %87[0, 0, 0] : f32 from vector<1x1x1xf32>
      %c0_34 = arith.constant 0 : index
      %c0_35 = arith.constant 0 : index
      %89 = vector.load %arg6[%c0_34, %c0_35] : memref<8x128xf32, #tpu.memory_space<vmem>>, vector<8x128xf32>
      %90 = vector.shape_cast %89 : vector<8x128xf32> to vector<1x8x128xf32>
      %cst_36 = arith.constant dense<0.000000e+00> : vector<1xf32>
      %91 = vector.multi_reduction <add>, %90, %cst_36 [1, 2] : vector<1x8x128xf32> to vector<1xf32>
      %92 = vector.shape_cast %91 : vector<1xf32> to vector<1x1x1xf32>
      %93 = vector.extract %92[0, 0, 0] : f32 from vector<1x1x1xf32>
      %c0_37 = arith.constant 0 : index
      %c0_38 = arith.constant 0 : index
      %94 = vector.load %arg7[%c0_37, %c0_38] : memref<8x128xf32, #tpu.memory_space<vmem>>, vector<8x128xf32>
      %95 = vector.shape_cast %94 : vector<8x128xf32> to vector<1x8x128xf32>
      %cst_39 = arith.constant dense<0.000000e+00> : vector<1xf32>
      %96 = vector.multi_reduction <add>, %95, %cst_39 [1, 2] : vector<1x8x128xf32> to vector<1xf32>
      %97 = vector.shape_cast %96 : vector<1xf32> to vector<1x1x1xf32>
      %98 = vector.extract %97[0, 0, 0] : f32 from vector<1x1x1xf32>
      %99 = tpu.iota {dimensions = array<i32: 1>} : vector<1x128xi32>
      %c0_i32_40 = arith.constant 0 : i32
      %100 = vector.broadcast %c0_i32_40 : i32 to vector<1x128xi32>
      %101 = arith.cmpi eq, %99, %100 : vector<1x128xi32>
      %cst_41 = arith.constant 0.000000e+00 : f32
      %102 = vector.broadcast %88 : f32 to vector<1x128xf32>
      %103 = vector.broadcast %cst_41 : f32 to vector<1x128xf32>
      %104 = arith.select %101, %102, %103 : vector<1x128xi1>, vector<1x128xf32>
      %c1_i32_42 = arith.constant 1 : i32
      %105 = vector.broadcast %c1_i32_42 : i32 to vector<1x128xi32>
      %106 = arith.cmpi eq, %99, %105 : vector<1x128xi32>
      %cst_43 = arith.constant 0.000000e+00 : f32
      %107 = vector.broadcast %93 : f32 to vector<1x128xf32>
      %108 = vector.broadcast %cst_43 : f32 to vector<1x128xf32>
      %109 = arith.select %106, %107, %108 : vector<1x128xi1>, vector<1x128xf32>
      %110 = arith.addf %104, %109 : vector<1x128xf32>
      %c2_i32_44 = arith.constant 2 : i32
      %111 = vector.broadcast %c2_i32_44 : i32 to vector<1x128xi32>
      %112 = arith.cmpi eq, %99, %111 : vector<1x128xi32>
      %cst_45 = arith.constant 0.000000e+00 : f32
      %113 = vector.broadcast %98 : f32 to vector<1x128xf32>
      %114 = vector.broadcast %cst_45 : f32 to vector<1x128xf32>
      %115 = arith.select %112, %113, %114 : vector<1x128xi1>, vector<1x128xf32>
      %116 = arith.addf %110, %115 : vector<1x128xf32>
      %c0_46 = arith.constant 0 : index
      %c0_47 = arith.constant 0 : index
      %c0_48 = arith.constant 0 : index
      %117 = vector.load %arg4[%c0_46, %c0_47, %c0_48] : memref<1x1x128xf32, #tpu.memory_space<vmem>>, vector<1x1x128xf32>
      %118 = vector.shape_cast %117 : vector<1x1x128xf32> to vector<1x128xf32>
      %119 = vector.shape_cast %116 : vector<1x128xf32> to vector<1x1x128xf32>
      tpu.vector_store %arg4[%c0_46, %c0_47, %c0_48], %119 {strides = array<i32>} : memref<1x1x128xf32, #tpu.memory_space<vmem>>, vector<1x1x128xf32>,
    } else {
    }
    return
  }
  func.func @transform_0(%arg0: i32, %arg1: i32) -> (i32, i32) {
    %c1_i32 = arith.constant 1 : i32
    %0 = arith.muli %arg0, %c1_i32 : i32
    %1 = arith.addi %0, %arg1 : i32
    %c0_i32 = arith.constant 0 : i32
    %c0_i32_0 = arith.constant 0 : i32
    return %c0_i32, %1 : i32, i32
  }
  func.func @transform_1(%arg0: i32, %arg1: i32) -> (i32, i32) {
    %c1_i32 = arith.constant 1 : i32
    %0 = arith.muli %arg0, %c1_i32 : i32
    %1 = arith.addi %0, %arg1 : i32
    %c0_i32 = arith.constant 0 : i32
    %c0_i32_0 = arith.constant 0 : i32
    return %c0_i32, %1 : i32, i32
  }
  func.func @transform_2(%arg0: i32, %arg1: i32) -> (i32, i32, i32) {
    %c0_i32 = arith.constant 0 : i32
    %c0_i32_0 = arith.constant 0 : i32
    %c0_i32_1 = arith.constant 0 : i32
    return %arg0, %c0_i32, %c0_i32_0 : i32, i32, i32
  }
}

</mosaic_0001>

<bundles_post_ra>
// kernel: tpu_custom_call.1
= control target key start
LH: loop header
LB: loop body
LE: loop exit
PB: predicated region body
PF: predicated region fallthrough
CT: control target
= control target key end

     0   :  { %7 = vsyncpa [#allocation6], 0  ;;  %s326_s0 = inlined_call_operand.hbm [shape: f32[32,128], index: 0, kind: input, shape index: {}]   ;;  %s327_s1 = inlined_call_operand.hbm [shape: s32[8,128], index: 1, kind: input, shape index: {}]   ;;  %s328_s2 = inlined_call_operand.hbm [shape: f32[1,1,128], index: 2, kind: output, shape index: {}]  }
   0x1   :  { %8 = vsyncpa [#allocation9], 0 }
   0x2   :  { %9 = vsyncpa [#allocation7], 0  ;;  %s17_s11 = sshll.u32 %s326_s0, 4  ;;  %s296_s12 = smov [#allocation5]   ;;  %s18_s11 = int_to_ptr.hbm [resolvable:$true] %s17_s11 }
   0x3   :  { %s19_s13 = sshll.u32 %s296_s12, 4  ;;  %s34_s16 = sshll.u32 %s327_s1, 4  ;;  %s20_s13 = int_to_ptr.vmem [resolvable:$true] %s19_s13  ;;  %s35_s16 = int_to_ptr.hbm [resolvable:$true] %s34_s16 }
   0x4   :  { %s297_s17 = smov 128   ;;  %s298_s18 = smov 8  }
   0x5   :  { %25 = dma.hbm_to_vmem [thread:$0]  %s18_s11, 512, %s20_s13, [#allocation6], %s297_s17, %s297_s17, %s298_s18  }
   0x6   :  { %s299_s19 = smov [#allocation8]  }
   0x7   :  { %s36_s20 = sshll.u32 %s299_s19, 4  ;;  %s37_s20 = int_to_ptr.vmem [resolvable:$true] %s36_s20 }
   0x8   :  { %39 = dma.hbm_to_vmem [thread:$0]  %s35_s16, 128, %s37_s20, [#allocation9]  }
   0x9   :  { %290 = dma.done.wait [#allocation6], 512  }
   0xa   :  { %291 = vsyncadd [#allocation6], 4294966784 }
   0xb   :  { %292 = dma.done.wait [#allocation9], 128  }
   0xc   :  { %293 = vsyncadd [#allocation9], 4294967168  ;;  %v66_v0 = vld [vmem:[#allocation5] sm:$0xff]  ;;  %v67_v1 = vld [vmem:[#allocation5 + $0x8] sm:$0xff]  ;;  %v300_v18 = vmov 0.0   ;;  %s301_s22 = smov [#allocation10]  }
   0xd   :  { %v68_v2 = vld [vmem:[#allocation5 + $0x10] sm:$0xff]  ;;  %v70_v3 = vmax.f32 %v66_v0, %v67_v1  ;;  %v69_v4 = vld [vmem:[#allocation5 + $0x18] sm:$0xff]  ;;  %v57_v15 = vld [vmem:[#allocation8] sm:$0xff]  ;;  %s179_s23 = sshll.u32 %s301_s22, 4  ;;  %s181_s26 = sshll.u32 %s328_s2, 4  ;;  %s180_s23 = int_to_ptr.vmem [resolvable:$true] %s179_s23  ;;  %s182_s26 = int_to_ptr.hbm [resolvable:$true] %s181_s26 }
   0xe   :  { %vm58_vm0 = vcmp.ge.s32.totalorder %v57_v15, 0  ;;  %vm59_vm1 = vcmp.le.s32.totalorder %v57_v15, 3  ;;  %vm106_vm3 = vcmp.eq.s32.totalorder %v57_v15, 0  ;;  %vm109_vm4 = vcmp.eq.s32.totalorder %v57_v15, 1 }
   0xf   :  { %v71_v5 = vmax.f32 %v70_v3, %v68_v2  ;;  %vm60_vm2 = vmand %vm58_vm0, %vm59_vm1  ;;  %v107_v34 = vsel %vm106_vm3, %v66_v0, 0.0  ;;  %v110_v35 = vsel %vm109_vm4, %v67_v1, 0.0  ;;  %vm112_vm5 = vcmp.eq.s32.totalorder %v57_v15, 2 }
  0x10   :  { %v192_v19 = vsel %vm60_vm2, 1.0, %v300_v18  ;;  %v111_v37 = vadd.f32 %v110_v35, %v107_v34  ;;  %v113_v38 = vsel %vm112_vm5, %v68_v2, 0.0  ;;  %vm115_vm6 = vcmp.eq.s32.totalorder %v57_v15, 3 }
  0x11   :  { %v72_v6 = vmax.f32 %v71_v5, %v69_v4  ;;  %151 = vadd.xlane.f32.xlu1 %v192_v19  ;;  %vm63_vm7 = vcmp.gt.s32.totalorder %v57_v15, 3  ;;  %v116_v42 = vsel %vm115_vm6, %v69_v4, 0.0 }
  0x12   :  { %v114_v40 = vadd.f32 %v113_v38, %v111_v37  ;;  %v193_v44 = vsel %vm63_vm7, 1.0, %v300_v18 }
  0x13   :  { %v73_v7 = vsub.f32 %v66_v0, %v72_v6  ;;  %v76_v8 = vsub.f32 %v67_v1, %v72_v6  ;;  %v79_v9 = vsub.f32 %v68_v2, %v72_v6  ;;  %v82_v10 = vsub.f32 %v69_v4, %v72_v6 }
  0x14   :  { %v117_v46 = vadd.f32 %v116_v42, %v114_v40 }
  0x15   :  { %v74_v11 = vmul.f32 1.442695, %v73_v7  ;;  %v77_v12 = vmul.f32 1.442695, %v76_v8  ;;  %v80_v13 = vmul.f32 1.442695, %v79_v9  ;;  %v160_v8 = vlaneseq }
  0x16   :  { %v83_v14 = vmul.f32 1.442695, %v82_v10 }
  0x17   :  { %206 = vpow2.f32 %v74_v11  ;;  %v161_v9 = vand.u32 127, %v160_v8 }
  0x18   :  { %208 = vpow2.f32 %v77_v12 }
  0x19   :  { %210 = vpow2.f32 %v80_v13  ;;  %vm162_vm8 = vcmp.eq.s32.totalorder %v161_v9, 0  ;;  %vm165_vm9 = vcmp.eq.s32.totalorder %v161_v9, 1  ;;  %vm169_vm10 = vcmp.eq.s32.totalorder %v161_v9, 2 }
  0x1a   :  { %212 = vpow2.f32 %v83_v14 }
  0x1d   :  { %v207_v16 = vpop.eup %206 }
  0x1e   :  { %v209_v17 = vpop.eup %208 }
  0x1f   :  { %v211_v20 = vpop.eup %210  ;;  %v85_v21 = vadd.f32 %v209_v17, %v207_v16 }
  0x20   :  { %v213_v22 = vpop.eup %212 }
  0x21   :  { %v86_v23 = vadd.f32 %v211_v20, %v85_v21 }
  0x23   :  { %v87_v24 = vadd.f32 %v213_v22, %v86_v23 }
  0x25   :  { %v90_v25 = vmul.f32 1.000001, %v87_v24  ;;  %214 = vlog2.f32 %v87_v24 }
  0x27   :  { %v91_v26 = vsub.f32 %v90_v25, %v207_v16  ;;  %v92_v27 = vsub.f32 %v90_v25, %v209_v17  ;;  %v94_v28 = vsub.f32 %v90_v25, %v211_v20  ;;  %v96_v30 = vsub.f32 %v90_v25, %v213_v22 }
  0x29   :  { %v93_v29 = vmul.f32 %v92_v27, %v91_v26 }
  0x2b   :  { %v95_v31 = vmul.f32 %v94_v28, %v93_v29  ;;  %v215_v32 = vpop.eup %214 }
  0x2c   :  { %v89_v36 = vmul.f32 0.6931472, %v215_v32 }
  0x2d   :  { %v97_v33 = vmul.f32 %v96_v30, %v95_v31 }
  0x2e   :  { %v99_v39 = vmul.f32 4.0, %v89_v36  ;;  %v119_v47 = vadd.f32 %v89_v36, %v72_v6 }
  0x2f   :  { %216 = vlog2.f32 %v97_v33 }
  0x30   :  { %v120_v49 = vsub.f32 %v119_v47, %v117_v46 }
  0x32   :  { %v121_v50 = vmul.f32 %v192_v19, %v120_v49 }
  0x35   :  { %v217_v41 = vpop.eup %216 }
  0x36   :  { %v101_v43 = vmul.f32 0.6931472, %v217_v41 }
  0x38   :  { %v102_v45 = vsub.f32 %v99_v39, %v101_v43 }
  0x3a   :  { %v103_v48 = vmul.f32 %v193_v44, %v102_v45 }
  0x3c   :  { %131 = vadd.xlane.f32.xlu0 %v103_v48 }
  0x44   :  { %141 = vadd.xlane.f32.xlu0 %v121_v50 }
  0x84   :  { %v152_v51 = vpop.xlane.xlu1 %151 }
  0x85   :  { %v153_v53 = vrot.slane %v152_v51, 4 }
  0x87   :  { %v154_v56 = vadd.f32 %v153_v53, %v152_v51 }
  0x89   :  { %v155_v59 = vrot.slane %v154_v56, 2 }
  0x8b   :  { %v156_v1 = vadd.f32 %v155_v59, %v154_v56 }
  0x8d   :  { %v157_v4 = vrot.slane %v156_v1, 1 }
  0x8f   :  { %v158_v7 = vadd.f32 %v157_v4, %v156_v1 }
  0xaf   :  { %v132_v52 = vpop.xlane.xlu0 %131 }
  0xb0   :  { %v133_v54 = vrot.slane %v132_v52, 4 }
  0xb2   :  { %v134_v55 = vadd.f32 %v133_v54, %v132_v52 }
  0xb4   :  { %v135_v57 = vrot.slane %v134_v55, 2 }
  0xb6   :  { %v136_v58 = vadd.f32 %v135_v57, %v134_v55 }
  0xb7   :  { %v142_v60 = vpop.xlane.xlu0 %141 }
  0xb8   :  { %v143_v61 = vrot.slane %v142_v60, 4  ;;  %v137_v62 = vrot.slane %v136_v58, 1 }
  0xba   :  { %v144_v63 = vadd.f32 %v143_v61, %v142_v60  ;;  %v138_v0 = vadd.f32 %v137_v62, %v136_v58 }
  0xbc   :  { %v145_v2 = vrot.slane %v144_v63, 2  ;;  %194 = vpush %v138_v0 }
  0xbe   :  { %v146_v3 = vadd.f32 %v145_v2, %v144_v63 }
  0xc0   :  { %v147_v5 = vrot.slane %v146_v3, 1 }
  0xc2   :  { %v148_v6 = vadd.f32 %v147_v5, %v146_v3 }
  0xc4   :  { %196 = vpush %v148_v6 }
  0xc5   :  { %198 = vpush %v158_v7 }
  0xed   :  { %s195_s0 = spop %194 }
  0xee   :  { %v163_v10 = vstv %s195_s0 }
  0xef   :  { %v164_v12 = vsel %vm162_vm8, %v163_v10, 0.0 }
  0xf5   :  { %s197_s1 = spop %196 }
  0xf6   :  { %v166_v11 = vstv %s197_s1  ;;  %s199_s21 = spop %198 }
  0xf7   :  { %v167_v13 = vsel %vm165_vm9, %v166_v11, 0.0  ;;  %v170_v14 = vstv %s199_s21 }
  0xf8   :  { %v168_v15 = vadd.f32 %v167_v13, %v164_v12  ;;  %v171_v16 = vsel %vm169_vm10, %v170_v14, 0.0 }
  0xfa   :  { %v172_v17 = vadd.f32 %v171_v16, %v168_v15 }
  0xfc   :  { %173 = vst [vmem:[#allocation10] sm:$0x1] %v172_v17 }
  0xfd   :  { %184 = dma.vmem_to_hbm [thread:$0]  %s180_s23, 16, %s182_s26, [#allocation7]  }
  0xfe   :  { %294 = dma.done.wait [#allocation7], 16  }
  0xff   :  { %295 = vsyncadd [#allocation7], 4294967280 }
 0x100   :  { %189 = vsyncpa [#allocation6], 1 }
 0x101   :  { %190 = vsyncpa [#allocation9], 1 }
 0x102   :  { %191 = vsyncpa [#allocation7], 1 }

</bundles_post_ra>
